<compile_context>
chip_gen: v7x
topology: tpu7x:2x2x1
jax: 0.10.0
libtpu: 0.0.40
codegen_flags: <defaults>
</compile_context>

<pallas_src>
import functools

import jax
import jax.numpy as jnp
from jax.experimental import pallas as pl
from jax.experimental.pallas import tpu as pltpu

D_IN, D_H, D_OUT = 160, 128, 64
_NEG_SLOPE = 0.01


def _mlp_kernel(x_ref, w1_ref, b1_ref, w2_ref, b2_ref, o_ref):
    # ---- Linear(160 -> 128) on the MXU, f32 accumulation ----
    x = x_ref[...].astype(w1_ref.dtype)          # no-op when x already bf16
    h = jnp.dot(x, w1_ref[...], preferred_element_type=jnp.float32)
    h = h + b1_ref[...]                          # (tb,128) + (1,128) broadcast
    h = jnp.where(h > 0, h, _NEG_SLOPE * h)      # LeakyReLU(0.01) in f32 (VPU)
    # ---- Linear(128 -> 64) on the MXU, f32 accumulation ----
    y = jnp.dot(h.astype(w2_ref.dtype), w2_ref[...],
                preferred_element_type=jnp.float32)
    y = y + b2_ref[...]                          # (tb,64) + (1,64) broadcast
    y = jnp.where(y > 0, y, _NEG_SLOPE * y)
    o_ref[...] = y.astype(o_ref.dtype)


def _round_up(n, m):
    return ((n + m - 1) // m) * m


@functools.partial(jax.jit, static_argnames=("tb", "matmul_dtype"))
def cfe_deap_forward(x, w1, b1, w2, b2, *, tb=4096, matmul_dtype=jnp.bfloat16):
    """x: (B, 160), w1: (160,128), b1: (128,), w2: (128,64), b2: (64,).

    Weights are stored as (in_features, out_features), i.e. y = x @ W + b,
    equivalent to PyTorch's x @ W.T with W of shape (out, in).
    Returns (B, 64) in x.dtype (pass bf16 x for bf16 I/O end-to-end).
    """
    B, d_in = x.shape
    assert d_in == w1.shape[0]
    d_h = w1.shape[1]
    d_out = w2.shape[1]

    # Tiny resident weights: cast once for the MXU; biases stay f32.
    w1c = w1.astype(matmul_dtype)
    w2c = w2.astype(matmul_dtype)
    b1_2d = b1.reshape(1, d_h).astype(jnp.float32)
    b2_2d = b2.reshape(1, d_out).astype(jnp.float32)

    # Batch tile:
    #   * 8-aligned (sublane constraint), never larger than the 8-rounded batch,
    #   * capped at round_up(ceil(B/2), 256) so the grid has >= 2 steps whenever
    #     the batch is big enough -- keeps both v7x TensorCores busy,
    #   * otherwise as large as `tb` (default 4096) to amortize step overhead.
    b8 = _round_up(B, 8)
    half_cap = _round_up(pl.cdiv(b8, 2), 256)
    tb_eff = max(8, min(tb, half_cap, b8))
    grid = pl.cdiv(B, tb_eff)          # ragged last block handled by Pallas

    out = pl.pallas_call(
        _mlp_kernel,
        out_shape=jax.ShapeDtypeStruct((B, d_out), x.dtype),
        grid_spec=pltpu.PrefetchScalarGridSpec(
            num_scalar_prefetch=0,
            grid=(grid,),
            in_specs=[
                pl.BlockSpec((tb_eff, d_in), lambda i: (i, 0)),    # x tile
                pl.BlockSpec((d_in, d_h), lambda i: (0, 0)),       # W1 (resident)
                pl.BlockSpec((1, d_h), lambda i: (0, 0)),          # b1
                pl.BlockSpec((d_h, d_out), lambda i: (0, 0)),      # W2 (resident)
                pl.BlockSpec((1, d_out), lambda i: (0, 0)),        # b2
            ],
            out_specs=pl.BlockSpec((tb_eff, d_out), lambda i: (i, 0)),
        ),
        compiler_params=pltpu.CompilerParams(
            dimension_semantics=("parallel",),   # shard batch steps across TCs (v7x)
        ),
    )(x, w1c, b1_2d, w2c, b2_2d)

    return out


def _init_params(key):
    """Deterministic init mimicking PyTorch nn.Linear default (U(+/- 1/sqrt(fan_in)))."""
    k1, k2, k3, k4 = jax.random.split(key, 4)
    lim1 = 1.0 / jnp.sqrt(160.0)
    lim2 = 1.0 / jnp.sqrt(128.0)
    w1 = jax.random.uniform(k1, (160, 128), jnp.float32, -lim1, lim1)
    b1 = jax.random.uniform(k2, (128,), jnp.float32, -lim1, lim1)
    w2 = jax.random.uniform(k3, (128, 64), jnp.float32, -lim2, lim2)
    b2 = jax.random.uniform(k4, (64,), jnp.float32, -lim2, lim2)
    return w1, b1, w2, b2


def _reference(x, w1, b1, w2, b2, matmul_dtype=jnp.float32):
    h = jnp.dot(x.astype(matmul_dtype), w1.astype(matmul_dtype),
                preferred_element_type=jnp.float32) + b1
    h = jnp.where(h > 0, h, _NEG_SLOPE * h)
    y = jnp.dot(h.astype(matmul_dtype), w2.astype(matmul_dtype),
                preferred_element_type=jnp.float32) + b2
    y = jnp.where(y > 0, y, _NEG_SLOPE * y)
    return y


if __name__ == "__main__":
    key = jax.random.PRNGKey(0)
    kx, kp = jax.random.split(key)
    w1, b1, w2, b2 = _init_params(kp)

    # 1) Exact f32 path, small batch (single grid step).
    B = 16
    x = jax.random.normal(kx, (B, D_IN), jnp.float32)
    out_f32 = jax.block_until_ready(
        cfe_deap_forward(x, w1, b1, w2, b2, matmul_dtype=jnp.float32))
    ref_f32 = _reference(x, w1, b1, w2, b2, jnp.float32)
    assert out_f32.shape == (B, D_OUT)
    assert jnp.allclose(out_f32, ref_f32, atol=1e-4, rtol=1e-4), "f32 mismatch"

    # 2) Ragged batch (B not multiple of 8), default bf16-matmul path, f32 I/O.
    #    Exercises the pad-free ragged last block.
    B2 = 50
    x2 = jax.random.normal(jax.random.fold_in(kx, 1), (B2, D_IN), jnp.float32)
    out2 = jax.block_until_ready(cfe_deap_forward(x2, w1, b1, w2, b2))
    ref2 = _reference(x2, w1, b1, w2, b2, jnp.bfloat16)
    assert out2.shape == (B2, D_OUT)
    assert jnp.allclose(out2, ref2, atol=1e-2, rtol=1e-2), "ragged bf16 mismatch"
    assert jnp.allclose(out2, _reference(x2, w1, b1, w2, b2, jnp.float32),
                        atol=5e-2, rtol=5e-2), "bf16 vs f32 drift"

    # 3) bf16 I/O end-to-end, batch large enough to trigger the >=2-step
    #    parallel grid (tb_eff capped at 512 here) with a ragged last block.
    B3 = 600
    x3 = jax.random.normal(jax.random.fold_in(kx, 2), (B3, D_IN),
                           jnp.float32).astype(jnp.bfloat16)
    out3 = jax.block_until_ready(cfe_deap_forward(x3, w1, b1, w2, b2))
    ref3 = _reference(x3.astype(jnp.float32), w1, b1, w2, b2, jnp.bfloat16)
    assert out3.dtype == jnp.bfloat16 and out3.shape == (B3, D_OUT)
    assert jnp.allclose(out3.astype(jnp.float32), ref3,
                        atol=5e-2, rtol=5e-2), "bf16 I/O mismatch"

    print("KERNEL_OK")
</pallas_src>

<mosaic_0001>
module attributes {stable_mosaic.version = 11 : i64} {
  func.func @_mlp_kernel(%arg0: i32, %arg1: memref<16x160xf32, #tpu.memory_space<vmem>>, %arg2: memref<160x128xf32, #tpu.memory_space<vmem>>, %arg3: memref<1x128xf32, #tpu.memory_space<vmem>>, %arg4: memref<128x64xf32, #tpu.memory_space<vmem>>, %arg5: memref<1x64xf32, #tpu.memory_space<vmem>>, %arg6: memref<16x64xf32, #tpu.memory_space<vmem>>) attributes {dimension_semantics = [#tpu.dimension_semantics<parallel>], iteration_bounds = array<i64: 1>, scalar_prefetch = 0 : i64, scratch_operands = 0 : i64, tpu.core_type = #tpu.core_type<tc>, window_params = [{transform_indices = @transform_0, window_bounds = array<i64: 16, 160>}, {pipeline_mode = #tpu.pipeline_mode<synchronous>, transform_indices = @transform_1, window_bounds = array<i64: 160, 128>}, {pipeline_mode = #tpu.pipeline_mode<synchronous>, transform_indices = @transform_2, window_bounds = array<i64: 1, 128>}, {pipeline_mode = #tpu.pipeline_mode<synchronous>, transform_indices = @transform_3, window_bounds = array<i64: 128, 64>}, {pipeline_mode = #tpu.pipeline_mode<synchronous>, transform_indices = @transform_4, window_bounds = array<i64: 1, 64>}, {transform_indices = @transform_5, window_bounds = array<i64: 16, 64>}]} {
    %c0 = arith.constant 0 : index
    %c0_0 = arith.constant 0 : index
    %0 = vector.load %arg1[%c0, %c0_0] : memref<16x160xf32, #tpu.memory_space<vmem>>, vector<16x160xf32>
    %c0_1 = arith.constant 0 : index
    %c0_2 = arith.constant 0 : index
    %1 = vector.load %arg2[%c0_1, %c0_2] : memref<160x128xf32, #tpu.memory_space<vmem>>, vector<160x128xf32>
    %cst = arith.constant dense<0.000000e+00> : vector<16x128xf32>
    %2 = tpu.matmul %0, %1, %cst {dimension_numbers = #tpu.dot_dimension_numbers<[1], [0], [0], [1], [0, 0, 1, 1], [], []>} : vector<16x160xf32>, vector<160x128xf32>, vector<16x128xf32> -> vector<16x128xf32>
    %c0_3 = arith.constant 0 : index
    %c0_4 = arith.constant 0 : index
    %3 = vector.load %arg3[%c0_3, %c0_4] : memref<1x128xf32, #tpu.memory_space<vmem>>, vector<1x128xf32>
    %4 = vector.broadcast %3 : vector<1x128xf32> to vector<16x128xf32>
    %5 = arith.addf %2, %4 : vector<16x128xf32>
    %cst_5 = arith.constant 0.000000e+00 : f32
    %6 = vector.broadcast %cst_5 : f32 to vector<16x128xf32>
    %7 = arith.cmpf ogt, %5, %6 : vector<16x128xf32>
    %cst_6 = arith.constant 0.00999999977 : f32
    %8 = vector.broadcast %cst_6 : f32 to vector<16x128xf32>
    %9 = arith.mulf %8, %5 : vector<16x128xf32>
    %10 = arith.select %7, %5, %9 : vector<16x128xi1>, vector<16x128xf32>
    %c0_7 = arith.constant 0 : index
    %c0_8 = arith.constant 0 : index
    %11 = vector.load %arg4[%c0_7, %c0_8] : memref<128x64xf32, #tpu.memory_space<vmem>>, vector<128x64xf32>
    %cst_9 = arith.constant dense<0.000000e+00> : vector<16x64xf32>
    %12 = tpu.matmul %10, %11, %cst_9 {dimension_numbers = #tpu.dot_dimension_numbers<[1], [0], [0], [1], [0, 0, 1, 1], [], []>} : vector<16x128xf32>, vector<128x64xf32>, vector<16x64xf32> -> vector<16x64xf32>
    %c0_10 = arith.constant 0 : index
    %c0_11 = arith.constant 0 : index
    %13 = vector.load %arg5[%c0_10, %c0_11] : memref<1x64xf32, #tpu.memory_space<vmem>>, vector<1x64xf32>
    %14 = vector.broadcast %13 : vector<1x64xf32> to vector<16x64xf32>
    %15 = arith.addf %12, %14 : vector<16x64xf32>
    %cst_12 = arith.constant 0.000000e+00 : f32
    %16 = vector.broadcast %cst_12 : f32 to vector<16x64xf32>
    %17 = arith.cmpf ogt, %15, %16 : vector<16x64xf32>
    %cst_13 = arith.constant 0.00999999977 : f32
    %18 = vector.broadcast %cst_13 : f32 to vector<16x64xf32>
    %19 = arith.mulf %18, %15 : vector<16x64xf32>
    %20 = arith.select %17, %15, %19 : vector<16x64xi1>, vector<16x64xf32>
    %c0_14 = arith.constant 0 : index
    %c0_15 = arith.constant 0 : index
    %21 = vector.load %arg6[%c0_14, %c0_15] : memref<16x64xf32, #tpu.memory_space<vmem>>, vector<16x64xf32>
    tpu.vector_store %arg6[%c0_14, %c0_15], %20 {strides = array<i32>} : memref<16x64xf32, #tpu.memory_space<vmem>>, vector<16x64xf32>,
    return
  }
  func.func @transform_0(%arg0: i32) -> (i32, i32) {
    %c0_i32 = arith.constant 0 : i32
    %c0_i32_0 = arith.constant 0 : i32
    return %arg0, %c0_i32 : i32, i32
  }
  func.func @transform_1(%arg0: i32) -> (i32, i32) {
    %c0_i32 = arith.constant 0 : i32
    %c0_i32_0 = arith.constant 0 : i32
    %c0_i32_1 = arith.constant 0 : i32
    return %c0_i32, %c0_i32_0 : i32, i32
  }
  func.func @transform_2(%arg0: i32) -> (i32, i32) {
    %c0_i32 = arith.constant 0 : i32
    %c0_i32_0 = arith.constant 0 : i32
    %c0_i32_1 = arith.constant 0 : i32
    return %c0_i32, %c0_i32_0 : i32, i32
  }
  func.func @transform_3(%arg0: i32) -> (i32, i32) {
    %c0_i32 = arith.constant 0 : i32
    %c0_i32_0 = arith.constant 0 : i32
    %c0_i32_1 = arith.constant 0 : i32
    return %c0_i32, %c0_i32_0 : i32, i32
  }
  func.func @transform_4(%arg0: i32) -> (i32, i32) {
    %c0_i32 = arith.constant 0 : i32
    %c0_i32_0 = arith.constant 0 : i32
    %c0_i32_1 = arith.constant 0 : i32
    return %c0_i32, %c0_i32_0 : i32, i32
  }
  func.func @transform_5(%arg0: i32) -> (i32, i32) {
    %c0_i32 = arith.constant 0 : i32
    %c0_i32_0 = arith.constant 0 : i32
    return %arg0, %c0_i32 : i32, i32
  }
}

</mosaic_0001>

<bundles_post_ra>
// kernel: cfe_deap_forward.1
= control target key start
LH: loop header
LB: loop body
LE: loop exit
PB: predicated region body
PF: predicated region fallthrough
CT: control target
= control target key end

     0   :  { %v410_v3 = vmov 0.0|0.0   ;;  %vm52_vm0 = vcmask 261120   ;;  %s594_s0 = inlined_call_operand.vmem [shape: f32[16,160], index: 0, kind: input, shape index: {}]   ;;  %s595_s1 = inlined_call_operand.vmem [shape: f32[160,128], index: 1, kind: input, shape index: {}]   ;;  %s596_s2 = inlined_call_operand.vmem [shape: f32[1,128], index: 2, kind: input, shape index: {}]   ;;  %s597_s3 = inlined_call_operand.vmem [shape: f32[128,64], index: 3, kind: input, shape index: {}]   ;;  %s598_s4 = inlined_call_operand.vmem [shape: f32[1,64], index: 4, kind: input, shape index: {}]   ;;  %s599_s5 = inlined_call_operand.hbm [shape: f32[16,64], index: 5, kind: output, shape index: {}]  }
   0x1   :  { %v25_v0 = vld [vmem:[%s595_s1] sm:$0xff]  ;;  %v26_v1 = vld [vmem:[%s595_s1 + $0x8] sm:$0xff]  ;;  %v27_v2 = vld [vmem:[%s595_s1 + $0x10] sm:$0xff]  ;;  %320 = vmatprep.subr.bf16.mxu0 %v410_v3 }
   0x2   :  { %v321_v4 = vpack.c.bf16 %v26_v1, %v25_v0  ;;  %v28_v5 = vld [vmem:[%s595_s1 + $0x18] sm:$0xff]  ;;  %v29_v7 = vld [vmem:[%s595_s1 + $0x20] sm:$0xff]  ;;  %v30_v8 = vld [vmem:[%s595_s1 + $0x28] sm:$0xff] }
   0x3   :  { %v324_v6 = vpack.c.bf16 %v28_v5, %v27_v2  ;;  %v22_v9 = vld [vmem:[%s594_s0 + $0x8] sm:$0xff]  ;;  %v327_v10 = vpack.c.bf16 %v30_v8, %v29_v7  ;;  %v31_v11 = vld [vmem:[%s595_s1 + $0x30] sm:$0xff]  ;;  %v32_v12 = vld [vmem:[%s595_s1 + $0x38] sm:$0xff] }
   0x4   :  { %322 = vmatpush1.bf16.msra.mxu0 %v321_v4  ;;  %264 = vmatprep.mubr.msk.f32.mxu0 %vm52_vm0, %v22_v9  ;;  %v140_v13 = vld [vmem:[%s597_s3] sm:$0xff]  ;;  %v141_v14 = vld [vmem:[%s597_s3 + $0x8] sm:$0xff]  ;;  %v142_v15 = vld [vmem:[%s597_s3 + $0x10] sm:$0xff]  ;;  %v330_v21 = vpack.c.bf16 %v32_v12, %v31_v11 }
   0x5   :  { %323 = vmatprep.subr.bf16.mxu0 %v410_v3  ;;  %v350_v16 = vpack.c.bf16 %v141_v14, %v140_v13  ;;  %v143_v17 = vld [vmem:[%s597_s3 + $0x18] sm:$0xff]  ;;  %v144_v19 = vld [vmem:[%s597_s3 + $0x20] sm:$0xff]  ;;  %v145_v20 = vld [vmem:[%s597_s3 + $0x28] sm:$0xff] }
   0x6   :  { %v354_v18 = vpack.c.bf16 %v143_v17, %v142_v15  ;;  %v33_v22 = vld [vmem:[%s595_s1 + $0x40] sm:$0xff]  ;;  %v34_v23 = vld [vmem:[%s595_s1 + $0x48] sm:$0xff] }
   0x7   :  { %351 = vmatprep.subr.bf16.mxu1 %v350_v16 }
   0x8   :  { %325 = vmatpush1.bf16.msra.mxu0 %v324_v6  ;;  %353 = vmatpush3.bf16.msra.mxu1 %v350_v16 }
   0x9   :  { %326 = vmatprep.subr.bf16.mxu0 %v410_v3 }
   0xc   :  { %328 = vmatpush1.bf16.msra.mxu0 %v327_v10 }
   0xd   :  { %329 = vmatprep.subr.bf16.mxu0 %v410_v3 }
   0xe   :  { %10 = vsyncpa [#allocation3], 0  ;;  %355 = vmatprep.subr.bf16.mxu1 %v354_v18  ;;  %v358_v24 = vpack.c.bf16 %v145_v20, %v144_v19  ;;  %v146_v25 = vld [vmem:[%s597_s3 + $0x30] sm:$0xff]  ;;  %v147_v26 = vld [vmem:[%s597_s3 + $0x38] sm:$0xff]  ;;  %v333_v27 = vpack.c.bf16 %v34_v23, %v33_v22  ;;  %vm244_vm4 = vcmask 523264  }
   0xf   :  { %v35_v28 = vld [vmem:[%s595_s1 + $0x50] sm:$0xff]  ;;  %v36_v29 = vld [vmem:[%s595_s1 + $0x58] sm:$0xff]  ;;  %357 = vmatpush3.bf16.msra.mxu1 %v354_v18  ;;  %v362_v30 = vpack.c.bf16 %v147_v26, %v146_v25  ;;  %v148_v31 = vld [vmem:[%s597_s3 + $0x40] sm:$0xff] }
  0x10   :  { %331 = vmatpush1.bf16.msra.mxu0 %v330_v21  ;;  %359 = vmatprep.subr.bf16.mxu1 %v358_v24  ;;  %v149_v32 = vld [vmem:[%s597_s3 + $0x48] sm:$0xff]  ;;  %v336_v33 = vpack.c.bf16 %v36_v29, %v35_v28  ;;  %v37_v34 = vld [vmem:[%s595_s1 + $0x60] sm:$0xff]  ;;  %v150_v37 = vld [vmem:[%s597_s3 + $0x50] sm:$0xff] }
  0x11   :  { %332 = vmatprep.subr.bf16.mxu0 %v410_v3  ;;  %v38_v35 = vld [vmem:[%s595_s1 + $0x68] sm:$0xff]  ;;  %v366_v36 = vpack.c.bf16 %v149_v32, %v148_v31  ;;  %v151_v38 = vld [vmem:[%s597_s3 + $0x58] sm:$0xff]  ;;  %v39_v40 = vld [vmem:[%s595_s1 + $0x70] sm:$0xff] }
  0x12   :  { %v339_v39 = vpack.c.bf16 %v38_v35, %v37_v34  ;;  %v40_v41 = vld [vmem:[%s595_s1 + $0x78] sm:$0xff]  ;;  %v370_v42 = vpack.c.bf16 %v151_v38, %v150_v37  ;;  %v41_v44 = vld [vmem:[%s595_s1 + $0x80] sm:$0xff]  ;;  %v42_v45 = vld [vmem:[%s595_s1 + $0x88] sm:$0xff] }
  0x13   :  { %361 = vmatpush3.bf16.msra.mxu1 %v358_v24  ;;  %v342_v43 = vpack.c.bf16 %v40_v41, %v39_v40  ;;  %v345_v46 = vpack.c.bf16 %v42_v45, %v41_v44  ;;  %v43_v47 = vld [vmem:[%s595_s1 + $0x90] sm:$0xff]  ;;  %v44_v48 = vld [vmem:[%s595_s1 + $0x98] sm:$0xff]  ;;  %v21_v50 = vld [vmem:[%s594_s0] sm:$0xff] }
  0x14   :  { %334 = vmatpush1.bf16.msra.mxu0 %v333_v27  ;;  %363 = vmatprep.subr.bf16.mxu1 %v362_v30  ;;  %v348_v49 = vpack.c.bf16 %v44_v48, %v43_v47  ;;  %v24_v51 = vld [vmem:[%s594_s0 + $0x18] sm:$0xff]  ;;  %v23_v52 = vld [vmem:[%s594_s0 + $0x10] sm:$0xff]  ;;  %v152_v53 = vld [vmem:[%s597_s3 + $0x60] sm:$0xff] }
  0x15   :  { %335 = vmatprep.subr.bf16.mxu0 %v410_v3  ;;  %v153_v54 = vld [vmem:[%s597_s3 + $0x68] sm:$0xff]  ;;  %v154_v56 = vld [vmem:[%s597_s3 + $0x70] sm:$0xff]  ;;  %v155_v57 = vld [vmem:[%s597_s3 + $0x78] sm:$0xff] }
  0x16   :  { %v374_v55 = vpack.c.bf16 %v153_v54, %v152_v53  ;;  %v378_v58 = vpack.c.bf16 %v155_v57, %v154_v56  ;;  %v263_v59 = vld [vmem:[%s596_s2] ss:$0 sm:$0xff]  ;;  %s411_s2 = smov [#allocation2]  }
  0x17   :  { %365 = vmatpush3.bf16.msra.mxu1 %v362_v30  ;;  %v266_v6 = vld [vmem:[%s598_s4] ss:$0 sm:$0xff]  ;;  %s252_s24 = sshll.u32 %s411_s2, 4  ;;  %s253_s24 = int_to_ptr.vmem [resolvable:$true] %s252_s24 }
  0x18   :  { %337 = vmatpush1.bf16.msra.mxu0 %v336_v33  ;;  %367 = vmatprep.subr.bf16.mxu1 %v366_v36  ;;  %s386_s25 = scalar_lea.vmem %s253_s24, 256  ;;  %p391_p1 = scmp.lt.s32.totalorder %s253_s24, %s253_s24 }
  0x19   :  { %338 = vmatprep.subr.bf16.mxu0 %v410_v3  ;;  %p387_p0 = scmp.ne.s32.totalorder %s253_s24, %s386_s25  ;;  %p392_p2 = scmp.lt.s32.totalorder %s386_s25, %s386_s25 }
  0x1b   :  { %369 = vmatpush3.bf16.msra.mxu1 %v366_v36  ;;  %p393_p3 = por %p392_p2, %p391_p1 }
  0x1c   :  { %340 = vmatpush1.bf16.msra.mxu0 %v339_v39  ;;  %371 = vmatprep.subr.bf16.mxu1 %v370_v42 }
  0x1d   :  { %341 = vmatprep.subr.bf16.mxu0 %v410_v3  ;;  %p394_p4 = pnand %p393_p3, %p387_p0 }
  0x1f   :  { %373 = vmatpush3.bf16.msra.mxu1 %v370_v42 }
  0x20   :  { %343 = vmatpush1.bf16.msra.mxu0 %v342_v43  ;;  %375 = vmatprep.subr.bf16.mxu1 %v374_v55 }
  0x21   :  { %344 = vmatprep.subr.bf16.mxu0 %v410_v3 }
  0x23   :  { %377 = vmatpush3.bf16.msra.mxu1 %v374_v55 }
  0x24   :  { %346 = vmatpush1.bf16.msra.mxu0 %v345_v46  ;;  %379 = vmatprep.subr.bf16.mxu1 %v378_v58 }
  0x25   :  { %347 = vmatprep.subr.bf16.mxu0 %v410_v3 }
  0x27   :  { %381 = vmatpush3.bf16.msra.mxu1 %v378_v58 }
  0x28   :  { %349 = vmatpush1.bf16.msra.mxu0 %v348_v49 }
  0x2b   :  { %124 = vmatmul.mubr.f32.vlgmr.msra.gmra.mrb[0].mxu0 %v21_v50 }
  0x2c   :  { %265 = vmatprep.mubr.msk.f32.mxu0 %vm52_vm0, %v24_v51 }
  0x2f   :  { %129 = vmatmul.mubr.f32.gmra.mrb[2].mxu0 %v23_v52 }
  0xfe   :  { %v125_v60 = vpop.f32.mrb[0].mxu0 }
  0xff   :  { %v126_v61 = vadd.f32 %v263_v59, %v125_v60  ;;  %v127_v62 = vpop.f32.mrb[1].mxu0 }
 0x101   :  { %vm134_vm1 = vcmp.gt.f32.partialorder %v126_v61, 0.0  ;;  %v136_v63 = vmul.f32 0.01, %v126_v61 }
 0x102   :  { %v130_v0 = vpop.f32.mrb[2].mxu0 }
 0x103   :  { %v131_v1 = vadd.f32 %v263_v59, %v130_v0  ;;  %v132_v2 = vpop.f32.mrb[3].mxu0  ;;  %v138_v3 = vsel %vm134_vm1, %v126_v61, %v136_v63 }
 0x104   :  { %317 = vmatprep.mubr.f32.mxu1 %v138_v3 }
 0x105   :  { %v137_v4 = vmul.f32 0.01, %v131_v1  ;;  %vm135_vm2 = vcmp.gt.f32.partialorder %v131_v1, 0.0 }
 0x107   :  { %v139_v5 = vsel %vm135_vm2, %v131_v1, %v137_v4 }
 0x108   :  { %318 = vmatmul.mubr.f32.vlgmr.msra.gmra.mrb[0].mxu1 %v139_v5 }
 0x1db   :  { %v319_v7 = vpop.f32.mrb[0].mxu1 }
 0x1dc   :  { %v235_v8 = vadd.f32 %v319_v7, %v266_v6  ;;  %v229_v9 = vpop.f32.mrb[1].mxu1 }
 0x1dd   :  { %v230_v10 = vadd.f32 %v266_v6, %v229_v9 }
 0x1de   :  { %vm239_vm3 = vcmp.gt.f32.partialorder %v235_v8, 0.0  ;;  %v241_v11 = vmul.f32 0.01, %v235_v8 }
 0x1df   :  { %vm238_vm5 = vcmp.gt.f32.partialorder %v230_v10, 0.0  ;;  %v240_v12 = vmul.f32 0.01, %v230_v10 }
 0x1e0   :  { %v243_v13 = vsel %vm239_vm3, %v235_v8, %v241_v11 }
 0x1e1   :  { %246 = vst.msk [vmem:[#allocation2 + $0x8] sm:$0xff] %vm244_vm4, %v243_v13  ;;  %v242_v14 = vsel %vm238_vm5, %v230_v10, %v240_v12 }
 0x1e2   :  { %245 = vst.msk [vmem:[#allocation2] sm:$0xff] %vm244_vm4, %v242_v14 }
 0x1e3   :  { %397 = shalt.err (!%p394_p4)
}
 0x1e4   :  { %s398_s27 = scalar_lea.hbm %s599_s5, 256 }
 0x1e5   :  { %p399_p5 = scmp.ne.s32.totalorder %s599_s5, %s398_s27  ;;  %p402_p6 = scmp.lt.u32.totalorder %s398_s27, %s599_s5 }
 0x1e7   :  { %p404_p7 = pnand %p402_p6, %p399_p5 }
 0x1e9   :  { %407 = shalt.err (!%p404_p7)
}
 0x1ea   :  { %s412_s7 = smov 128   ;;  %s413_s8 = smov 8  }
 0x1eb   :  { %258 = dma.vmem_to_hbm [thread:$0]  %s253_s24, 256, %s599_s5, [#allocation3], %s412_s7, %s412_s7, %s413_s8  }
 0x1ec   :  { %408 = dma.done.wait [#allocation3], 256  }
 0x1ed   :  { %409 = vsyncadd [#allocation3], 4294967040 }
 0x1ee   :  { %262 = vsyncpa [#allocation3], 1 }

</bundles_post_ra>
